<compile_context>
chip_gen: v6e
topology: v6e:2x2x1
jax: 0.10.0
libtpu: 0.0.40
codegen_flags: <defaults>
</compile_context>

<pallas_src>
import jax
import jax.numpy as jnp
from jax.experimental import pallas as pl
from jax.experimental.pallas import tpu as pltpu


def _round_up(x, m):
    return ((x + m - 1) // m) * m


def _bilinear_kernel(x1_ref, w_ref, x2_ref, b_ref, o_ref):
    # (TB, N1) @ (N1, N2) on the MXU, f32 accumulation.  Inputs are fed in
    # their native dtype (bf16 or f32) -- no pre-dot upcast.
    t = jnp.dot(x1_ref[...], w_ref[...], preferred_element_type=jnp.float32)  # (TB, N2)
    x2 = x2_ref[...].astype(jnp.float32)                                      # (TB, N2)
    y = jnp.sum(t * x2, axis=-1, keepdims=True)                               # (TB, 1)
    o_ref[...] = (y + b_ref[0, 0]).astype(o_ref.dtype)


def classifier_forward(x1, x2, weight, bias, *, block_b=512):
    """Pallas equivalent of nn.Bilinear(num_inputs1, num_inputs2, 1).

    x1:     (B, N1)
    x2:     (B, N2)
    weight: (N1, N2)   -- PyTorch weight[0]
    bias:   scalar / (1,) / (1, 1)
    returns (B, 1) float32
    """
    B, N1 = x1.shape
    B2, N2 = x2.shape
    assert B == B2, "x1/x2 batch mismatch"
    assert weight.shape == (N1, N2)

    bias = jnp.asarray(bias, dtype=jnp.float32).reshape(1, 1)

    # Batch tile: large enough to amortize per-step overhead, sublane aligned
    # (multiple of 8), clamped so tiny batches run as a single full block.
    tb = min(block_b, _round_up(B, 8))
    grid = (pl.cdiv(B, tb),)

    itemsize = lambda a: a.dtype.itemsize
    cost = pl.CostEstimate(
        flops=2 * B * N1 * N2 + 2 * B * N2,
        transcendentals=0,
        bytes_accessed=(
            x1.size * itemsize(x1)
            + x2.size * itemsize(x2)
            + weight.size * itemsize(weight)
            + B * 4
            + 4
        ),
    )

    return pl.pallas_call(
        _bilinear_kernel,
        out_shape=jax.ShapeDtypeStruct((B, 1), jnp.float32),
        grid_spec=pltpu.PrefetchScalarGridSpec(
            num_scalar_prefetch=0,
            grid=grid,
            in_specs=[
                # x1 batch tile, streamed & double-buffered.
                pl.BlockSpec((tb, N1), lambda i: (i, 0)),
                # Weight: same block every step -> VMEM-resident, one DMA.
                pl.BlockSpec((N1, N2), lambda i: (0, 0)),
                # x2 batch tile, streamed & double-buffered.
                pl.BlockSpec((tb, N2), lambda i: (i, 0)),
                # Bias scalar in SMEM (no padded VMEM tile, no per-step DMA).
                pl.BlockSpec(memory_space=pltpu.MemorySpace.SMEM),
            ],
            out_specs=pl.BlockSpec((tb, 1), lambda i: (i, 0)),
        ),
        compiler_params=pltpu.CompilerParams(
            # Batch tiles are independent -> shard across v7x's 2 TensorCores.
            dimension_semantics=("parallel",),
            vmem_limit_bytes=48 * 1024 * 1024,
        ),
        cost_estimate=cost,
    )(x1, weight, x2, bias)


if __name__ == "__main__":
    # Small shapes consistent with the module's forward.
    B, N1, N2 = 16, 64, 128

    key = jax.random.PRNGKey(0)
    k1, k2, kw, kb = jax.random.split(key, 4)

    x1 = jax.random.normal(k1, (B, N1), dtype=jnp.float32)
    x2 = jax.random.normal(k2, (B, N2), dtype=jnp.float32)

    # Deterministic parameter init (PyTorch nn.Bilinear uses U(-1/sqrt(N1), 1/sqrt(N1)))
    bound = 1.0 / jnp.sqrt(jnp.float32(N1))
    weight = jax.random.uniform(kw, (N1, N2), dtype=jnp.float32,
                                minval=-bound, maxval=bound)
    bias = jax.random.uniform(kb, (1, 1), dtype=jnp.float32,
                              minval=-bound, maxval=bound)

    out = classifier_forward(x1, x2, weight, bias)
    out = jax.block_until_ready(out)

    # Reference check against plain JAX bilinear form.
    ref = jnp.einsum("bi,ij,bj->b", x1, weight, x2)[:, None] + bias[0, 0]
    assert out.shape == (B, 1)
    assert jnp.allclose(out, ref, atol=1e-4, rtol=1e-4)

    print("KERNEL_OK")
</pallas_src>

<mosaic_0001>
module attributes {stable_mosaic.version = 11 : i64} {
  func.func @_bilinear_kernel(%arg0: i32, %arg1: memref<16x64xf32, #tpu.memory_space<vmem>>, %arg2: memref<64x128xf32, #tpu.memory_space<vmem>>, %arg3: memref<16x128xf32, #tpu.memory_space<vmem>>, %arg4: memref<1x1xf32, #tpu.memory_space<smem>>, %arg5: memref<16x1xf32, #tpu.memory_space<vmem>>) attributes {dimension_semantics = [#tpu.dimension_semantics<parallel>], iteration_bounds = array<i64: 1>, scalar_prefetch = 0 : i64, scratch_operands = 0 : i64, tpu.core_type = #tpu.core_type<tc>, window_params = [{transform_indices = @transform_0, window_bounds = array<i64: 16, 64>}, {pipeline_mode = #tpu.pipeline_mode<synchronous>, transform_indices = @transform_1, window_bounds = array<i64: 64, 128>}, {transform_indices = @transform_2, window_bounds = array<i64: 16, 128>}, {transform_indices = @transform_3, window_bounds = array<i64: 1, 1>}, {transform_indices = @transform_4, window_bounds = array<i64: 16, 1>}]} {
    %c0 = arith.constant 0 : index
    %c0_0 = arith.constant 0 : index
    %0 = vector.load %arg1[%c0, %c0_0] : memref<16x64xf32, #tpu.memory_space<vmem>>, vector<16x64xf32>
    %c0_1 = arith.constant 0 : index
    %c0_2 = arith.constant 0 : index
    %1 = vector.load %arg2[%c0_1, %c0_2] : memref<64x128xf32, #tpu.memory_space<vmem>>, vector<64x128xf32>
    %cst = arith.constant dense<0.000000e+00> : vector<16x128xf32>
    %2 = tpu.matmul %0, %1, %cst {dimension_numbers = #tpu.dot_dimension_numbers<[1], [0], [0], [1], [0, 0, 1, 1], [], []>} : vector<16x64xf32>, vector<64x128xf32>, vector<16x128xf32> -> vector<16x128xf32>
    %c0_3 = arith.constant 0 : index
    %c0_4 = arith.constant 0 : index
    %3 = vector.load %arg3[%c0_3, %c0_4] : memref<16x128xf32, #tpu.memory_space<vmem>>, vector<16x128xf32>
    %4 = arith.mulf %2, %3 : vector<16x128xf32>
    %cst_5 = arith.constant dense<0.000000e+00> : vector<16xf32>
    %5 = vector.multi_reduction <add>, %4, %cst_5 [1] : vector<16x128xf32> to vector<16xf32>
    %6 = vector.shape_cast %5 : vector<16xf32> to vector<16x1xf32>
    %c0_6 = arith.constant 0 : index
    %c0_7 = arith.constant 0 : index
    %7 = memref.load %arg4[%c0_6, %c0_7] : memref<1x1xf32, #tpu.memory_space<smem>>
    %8 = vector.broadcast %7 : f32 to vector<16x1xf32>
    %9 = arith.addf %6, %8 : vector<16x1xf32>
    %c0_8 = arith.constant 0 : index
    %c0_9 = arith.constant 0 : index
    %10 = vector.load %arg5[%c0_8, %c0_9] : memref<16x1xf32, #tpu.memory_space<vmem>>, vector<16x1xf32>
    tpu.vector_store %arg5[%c0_8, %c0_9], %9 {strides = array<i32>} : memref<16x1xf32, #tpu.memory_space<vmem>>, vector<16x1xf32>,
    return
  }
  func.func @transform_0(%arg0: i32) -> (i32, i32) {
    %c0_i32 = arith.constant 0 : i32
    %c0_i32_0 = arith.constant 0 : i32
    return %arg0, %c0_i32 : i32, i32
  }
  func.func @transform_1(%arg0: i32) -> (i32, i32) {
    %c0_i32 = arith.constant 0 : i32
    %c0_i32_0 = arith.constant 0 : i32
    %c0_i32_1 = arith.constant 0 : i32
    return %c0_i32, %c0_i32_0 : i32, i32
  }
  func.func @transform_2(%arg0: i32) -> (i32, i32) {
    %c0_i32 = arith.constant 0 : i32
    %c0_i32_0 = arith.constant 0 : i32
    return %arg0, %c0_i32 : i32, i32
  }
  func.func @transform_3(%arg0: i32) -> (i32, i32) {
    %c0_i32 = arith.constant 0 : i32
    %c0_i32_0 = arith.constant 0 : i32
    %c0_i32_1 = arith.constant 0 : i32
    return %c0_i32, %c0_i32_0 : i32, i32
  }
  func.func @transform_4(%arg0: i32) -> (i32, i32) {
    %c0_i32 = arith.constant 0 : i32
    %c0_i32_0 = arith.constant 0 : i32
    return %arg0, %c0_i32 : i32, i32
  }
}

</mosaic_0001>

<bundles_post_ra>
// kernel: tpu_custom_call.1
= control target key start
LH: loop header
LB: loop body
LE: loop exit
PB: predicated region body
PF: predicated region fallthrough
CT: control target
= control target key end

     0   :  { %10 = vsyncpa [#allocation4], 0  ;;  %s322_s0 = inlined_call_operand.hbm [shape: f32[16,64], index: 0, kind: input, shape index: {}]   ;;  %s323_s1 = inlined_call_operand.hbm [shape: f32[64,128], index: 1, kind: input, shape index: {}]   ;;  %s324_s2 = inlined_call_operand.hbm [shape: f32[16,128], index: 2, kind: input, shape index: {}]   ;;  %s325_s3 = inlined_call_operand.<no memory space> [shape: f32[1,1], index: 3, kind: input, shape index: {}]   ;;  %s326_s4 = inlined_call_operand.vmem [shape: f32[16,1], index: 4, kind: output, shape index: {}]  }
   0x1   :  { %11 = vsyncpa [#allocation6], 0  ;;  %s272_s15 = smov [#allocation5]   ;;  %s273_s17 = smov [#allocation3]  }
   0x2   :  { %s29_s16 = sshll.u32 %s272_s15, 4  ;;  %s17_s18 = sshll.u32 %s273_s17, 4  ;;  %s30_s16 = int_to_ptr.vmem [resolvable:$true] %s29_s16  ;;  %s18_s18 = int_to_ptr.vmem [resolvable:$true] %s17_s18 }
   0x3   :  { %s216_s19 = scalar_lea.vmem %s30_s16, 1024  ;;  %p221_p1 = scmp.lt.s32.totalorder %s30_s16, %s30_s16 }
   0x4   :  { %p217_p0 = scmp.ne.s32.totalorder %s30_s16, %s216_s19  ;;  %p222_p2 = scmp.lt.s32.totalorder %s216_s19, %s216_s19 }
   0x6   :  { %p223_p3 = por %p222_p2, %p221_p1 }
   0x8   :  { %p224_p4 = pnand %p223_p3, %p217_p0 }
   0xa   :  { %227 = shalt.err (!%p224_p4)
}
   0xb   :  { %s274_s20 = smov 128   ;;  %s275_s21 = smov 8  }
   0xc   :  { %35 = dma.hbm_to_vmem [thread:$0]  %s323_s1, 1024, %s30_s16, [#allocation6], %s274_s20, %s274_s20, %s275_s21  }
   0xd   :  { %s236_s24 = scalar_lea.vmem %s18_s18, 256  ;;  %p241_p6 = scmp.lt.s32.totalorder %s18_s18, %s18_s18 }
   0xe   :  { %p237_p5 = scmp.ne.s32.totalorder %s18_s18, %s236_s24  ;;  %p242_p7 = scmp.lt.s32.totalorder %s236_s24, %s236_s24 }
  0x10   :  { %p243_p8 = por %p242_p7, %p241_p6 }
  0x12   :  { %p244_p9 = pnand %p243_p8, %p237_p5 }
  0x14   :  { %247 = shalt.err (!%p244_p9)
}
  0x15   :  { %23 = dma.hbm_to_vmem [thread:$0]  %s322_s0, 256, %s18_s18, [#allocation4], %s274_s20, %s274_s20, %s275_s21  }
  0x16   :  { %s276_s27 = smov [#allocation7]  }
  0x17   :  { %s41_s28 = sshll.u32 %s276_s27, 4  ;;  %s42_s28 = int_to_ptr.vmem [resolvable:$true] %s41_s28 }
  0x18   :  { %s256_s29 = scalar_lea.vmem %s42_s28, 256  ;;  %p261_p11 = scmp.lt.s32.totalorder %s42_s28, %s42_s28 }
  0x19   :  { %p257_p10 = scmp.ne.s32.totalorder %s42_s28, %s256_s29  ;;  %p262_p12 = scmp.lt.s32.totalorder %s256_s29, %s256_s29 }
  0x1b   :  { %p263_p13 = por %p262_p12, %p261_p11 }
  0x1d   :  { %p264_p0 = pnand %p263_p13, %p257_p10 }
  0x1f   :  { %267 = shalt.err (!%p264_p0)
}
  0x20   :  { %47 = dma.hbm_to_vmem [thread:$0]  %s324_s2, 256, %s42_s28, [#allocation6], %s274_s20, %s274_s20, %s275_s21  }
  0x21   :  { %268 = dma.done.wait [#allocation4], 256  }
  0x22   :  { %269 = vsyncadd [#allocation4], 4294967040 }
  0x23   :  { %270 = dma.done.wait [#allocation6], 1280  }
  0x24   :  { %271 = vsyncadd [#allocation6], 4294966016  ;;  %v68_v0 = vld [vmem:[#allocation5 + $0x38] sm:$0xff]  ;;  %v67_v1 = vld [vmem:[#allocation5 + $0x30] sm:$0xff]  ;;  %vm69_vm0 = vcmask 523264   ;;  %v160_v16 = vstv %s325_s3  ;;  %vm163_vm1 = vcmask 7168  }
  0x25   :  { %184 = vmatprep.subr.mxu0 %v68_v0  ;;  %v66_v2 = vld [vmem:[#allocation5 + $0x28] sm:$0xff]  ;;  %v59_v3 = vld [vmem:[#allocation3] sm:$0xff]  ;;  %v65_v4 = vld [vmem:[#allocation5 + $0x20] sm:$0xff] }
  0x26   :  { %185 = vmatpush3.msra.mxu0 %v68_v0  ;;  %200 = vmatprep.mubr.msk.f32.mxu0 %vm69_vm0, %v59_v3  ;;  %v64_v5 = vld [vmem:[#allocation5 + $0x18] sm:$0xff]  ;;  %v63_v6 = vld [vmem:[#allocation5 + $0x10] sm:$0xff]  ;;  %v62_v7 = vld [vmem:[#allocation5 + $0x8] sm:$0xff] }
  0x27   :  { %186 = vmatprep.subr.mxu0 %v67_v1  ;;  %v61_v8 = vld [vmem:[#allocation5] sm:$0xff]  ;;  %v60_v9 = vld [vmem:[#allocation3 + $0x8] sm:$0xff]  ;;  %v152_v14 = vld [vmem:[#allocation7 + $0x8] sm:$0xff] }
  0x28   :  { %187 = vmatpush3.msra.mxu0 %v67_v1  ;;  %v151_v11 = vld [vmem:[#allocation7] sm:$0xff] }
  0x29   :  { %188 = vmatprep.subr.mxu0 %v66_v2 }
  0x2a   :  { %189 = vmatpush3.msra.mxu0 %v66_v2 }
  0x2b   :  { %190 = vmatprep.subr.mxu0 %v65_v4 }
  0x2c   :  { %191 = vmatpush3.msra.mxu0 %v65_v4 }
  0x2d   :  { %192 = vmatprep.subr.mxu0 %v64_v5 }
  0x2e   :  { %193 = vmatpush3.msra.mxu0 %v64_v5 }
  0x2f   :  { %194 = vmatprep.subr.mxu0 %v63_v6 }
  0x30   :  { %195 = vmatpush3.msra.mxu0 %v63_v6 }
  0x31   :  { %196 = vmatprep.subr.mxu0 %v62_v7 }
  0x32   :  { %197 = vmatpush3.msra.mxu0 %v62_v7 }
  0x33   :  { %198 = vmatprep.subr.mxu0 %v61_v8 }
  0x34   :  { %199 = vmatpush3.msra.mxu0 %v61_v8 }
  0x35   :  { %201 = vmatmul.mubr.msk.f32.vlgmr.msra.gmra.mxu0 %vm69_vm0, %v60_v9 }
  0xf5   :  { %v202_v10 = vpop.f32.mrf.mxu0 }
  0xf6   :  { %v154_v15 = vmul.f32 %v202_v10, %v152_v14 }
  0xf7   :  { %v142_v12 = vpop.f32.mrf.mxu0 }
  0xf8   :  { %v153_v13 = vmul.f32 %v151_v11, %v142_v12 }
  0xfa   :  { %155 = vadd.xlane.f32.xlu0 %v153_v13 }
  0xfe   :  { %157 = vadd.xlane.f32.xlu0 %v154_v15 }
 0x183   :  { %v156_v17 = vpop.xlane.xlu0 %155 }
 0x184   :  { %v161_v18 = vadd.f32 %v160_v16, %v156_v17 }
 0x186   :  { %164 = vst.msk [vmem:[%s326_s4] sm:$0xff] %vm163_vm1, %v161_v18 }
 0x187   :  { %v158_v19 = vpop.xlane.xlu0 %157 }
 0x188   :  { %v162_v20 = vadd.f32 %v160_v16, %v158_v19 }
 0x18a   :  { %165 = vst.msk [vmem:[%s326_s4 + $0x8] sm:$0xff] %vm163_vm1, %v162_v20 }
 0x18b   :  { %170 = vsyncpa [#allocation4], 1 }
 0x18c   :  { %171 = vsyncpa [#allocation6], 1 }

</bundles_post_ra>
